<compile_context>
chip_gen: v6e
topology: v6e:2x2x1
jax: 0.10.0
libtpu: 0.0.40
codegen_flags: <defaults>
</compile_context>

<pallas_src>
from functools import partial

import jax
import jax.numpy as jnp
from jax.experimental import pallas as pl
from jax.experimental.pallas import tpu as pltpu


# ----------------------------- Pallas kernel --------------------------------

def shadow_noise_kernel(noise_ref, coeffs_ref, out_ref):
    # noise_ref : (B, NB)  f32 VMEM   -- shadow-expectation surrogate, in [-1, 1]
    # coeffs_ref: (NB, Zp) f32 VMEM   -- Zp = z_dim padded to a multiple of 128
    # out_ref   : (B, Zp)  f32 VMEM   -- lane-dense, unmasked vst
    noise = noise_ref[...]
    coeffs = coeffs_ref[...]
    NB = coeffs.shape[0]

    # K = num_basis (=3) contraction on the VPU: broadcast FMAs, no MXU.
    acc = noise[:, 0:1] * coeffs[0:1, :]
    for k in range(1, NB):
        acc = acc + noise[:, k:k + 1] * coeffs[k:k + 1, :]
    out_ref[...] = acc


# ----------------------------- Jitted wrapper --------------------------------

@partial(jax.jit, static_argnames=("batch_size", "z_dim"))
def quantum_shadow_noise_forward(key, coeffs_padded, *, batch_size, z_dim):
    """Returns (out, noise): noise ~ U[-1,1], out = noise @ coeffs  (B, z_dim)."""
    NB, Zp = coeffs_padded.shape

    # TODO(synk): PennyLane shadow_expval circuit (stochastic 300-shot
    # classical-shadow estimator over random Pauli tensors) has no Pallas
    # equivalent; a uniform [-1, 1] surrogate (the range of Pauli expectation
    # values) is sampled here instead.
    noise = jax.random.uniform(
        key, (batch_size, NB), dtype=jnp.float32, minval=-1.0, maxval=1.0)

    out_padded = pl.pallas_call(
        shadow_noise_kernel,
        out_shape=jax.ShapeDtypeStruct((batch_size, Zp), jnp.float32),
        in_specs=[
            pl.BlockSpec(memory_space=pltpu.MemorySpace.VMEM),   # noise
            pl.BlockSpec(memory_space=pltpu.MemorySpace.VMEM),   # coeffs (padded)
        ],
        out_specs=pl.BlockSpec(memory_space=pltpu.MemorySpace.VMEM),
        cost_estimate=pl.CostEstimate(
            flops=2 * batch_size * NB * Zp,
            transcendentals=0,
            bytes_accessed=4 * (NB * Zp + batch_size * (NB + Zp)),
        ),
    )(noise, coeffs_padded)

    return out_padded[:, :z_dim], noise


# ----------------------------- Module wrapper --------------------------------

class QuantumShadowNoiseJAX:
    def __init__(self, z_dim, *, num_qubits=8, num_layers=3, num_basis=3,
                 key=jax.random.PRNGKey(0)):
        self.z_dim = z_dim
        self.num_qubits = num_qubits
        self.num_layers = num_layers
        self.num_basis = num_basis

        k_w, k_c, k_n = jax.random.split(key, 3)
        # weights ~ U(-pi, pi), shape (num_layers, 2*num_qubits - 1). They
        # parametrize the quantum circuit; the circuit itself is not
        # translatable, so they are kept only for shape fidelity.
        self.weights = jax.random.uniform(
            k_w, (num_layers, 2 * num_qubits - 1),
            minval=-jnp.pi, maxval=jnp.pi, dtype=jnp.float32)
        # coeffs ~ U(0, 1), shape (num_basis, z_dim) — the trainable mixing matrix.
        # TODO(synk): no custom_vjp is defined; gradients w.r.t. coeffs through
        # pallas_call are out of scope for this forward-only kernel.
        self.coeffs = jax.random.uniform(
            k_c, (num_basis, z_dim), dtype=jnp.float32)

        # One-time pad of z_dim up to a multiple of 128 for lane-dense stores.
        z_pad = pl.cdiv(z_dim, 128) * 128
        self.coeffs_padded = jnp.pad(
            self.coeffs, ((0, 0), (0, z_pad - z_dim)))

        # Device-resident key; split per call so noise is resampled every
        # forward pass (matches the stochastic PyTorch module).
        self._key = k_n

    def __call__(self, batch_size):
        self._key, sub = jax.random.split(self._key)
        out, _ = quantum_shadow_noise_forward(
            sub, self.coeffs_padded, batch_size=batch_size, z_dim=self.z_dim)
        return out


# --------------------------------- main --------------------------------------

if __name__ == "__main__":
    z_dim = 32
    batch_size = 8

    module = QuantumShadowNoiseJAX(z_dim, key=jax.random.PRNGKey(0))

    # Forward pass through the fused kernel.
    out = module(batch_size)
    out = jax.block_until_ready(out)
    assert out.shape == (batch_size, z_dim)
    assert out.dtype == jnp.float32

    # Direct correctness check of the in-kernel contraction: out must equal
    # noise @ coeffs for the sampled noise.
    check_key = jax.random.PRNGKey(4321)
    out2, noise2 = quantum_shadow_noise_forward(
        check_key, module.coeffs_padded, batch_size=batch_size, z_dim=z_dim)
    out2 = jax.block_until_ready(out2)
    expected = noise2 @ module.coeffs
    assert noise2.shape == (batch_size, module.num_basis)
    assert bool(jnp.all(noise2 >= -1.0)) and bool(jnp.all(noise2 <= 1.0))
    assert jnp.allclose(out2, expected, atol=1e-5, rtol=1e-5)

    # Fresh key each call -> noise (and output) is resampled every forward.
    out_next = jax.block_until_ready(module(batch_size))
    assert not bool(jnp.allclose(out, out_next))

    print("KERNEL_OK")
</pallas_src>

<mosaic_0001>
module attributes {stable_mosaic.version = 11 : i64} {
  func.func @shadow_noise_kernel(%arg0: memref<8x3xf32, #tpu.memory_space<vmem>>, %arg1: memref<3x128xf32, #tpu.memory_space<vmem>>, %arg2: memref<8x128xf32, #tpu.memory_space<vmem>>) attributes {dimension_semantics = [], scalar_prefetch = 0 : i64, scratch_operands = 0 : i64, tpu.core_type = #tpu.core_type<tc>} {
    %c0 = arith.constant 0 : index
    %c0_0 = arith.constant 0 : index
    %0 = vector.load %arg0[%c0, %c0_0] : memref<8x3xf32, #tpu.memory_space<vmem>>, vector<8x3xf32>
    %c0_1 = arith.constant 0 : index
    %c0_2 = arith.constant 0 : index
    %1 = vector.load %arg1[%c0_1, %c0_2] : memref<3x128xf32, #tpu.memory_space<vmem>>, vector<3x128xf32>
    %2 = vector.extract_strided_slice %0 {offsets = [0, 0], sizes = [8, 1], strides = [1, 1]} : vector<8x3xf32> to vector<8x1xf32>
    %3 = vector.extract_strided_slice %1 {offsets = [0, 0], sizes = [1, 128], strides = [1, 1]} : vector<3x128xf32> to vector<1x128xf32>
    %4 = vector.broadcast %2 : vector<8x1xf32> to vector<8x128xf32>
    %5 = vector.broadcast %3 : vector<1x128xf32> to vector<8x128xf32>
    %6 = arith.mulf %4, %5 : vector<8x128xf32>
    %7 = vector.extract_strided_slice %0 {offsets = [0, 1], sizes = [8, 1], strides = [1, 1]} : vector<8x3xf32> to vector<8x1xf32>
    %8 = vector.extract_strided_slice %1 {offsets = [1, 0], sizes = [1, 128], strides = [1, 1]} : vector<3x128xf32> to vector<1x128xf32>
    %9 = vector.broadcast %7 : vector<8x1xf32> to vector<8x128xf32>
    %10 = vector.broadcast %8 : vector<1x128xf32> to vector<8x128xf32>
    %11 = arith.mulf %9, %10 : vector<8x128xf32>
    %12 = arith.addf %6, %11 : vector<8x128xf32>
    %13 = vector.extract_strided_slice %0 {offsets = [0, 2], sizes = [8, 1], strides = [1, 1]} : vector<8x3xf32> to vector<8x1xf32>
    %14 = vector.extract_strided_slice %1 {offsets = [2, 0], sizes = [1, 128], strides = [1, 1]} : vector<3x128xf32> to vector<1x128xf32>
    %15 = vector.broadcast %13 : vector<8x1xf32> to vector<8x128xf32>
    %16 = vector.broadcast %14 : vector<1x128xf32> to vector<8x128xf32>
    %17 = arith.mulf %15, %16 : vector<8x128xf32>
    %18 = arith.addf %12, %17 : vector<8x128xf32>
    %c0_3 = arith.constant 0 : index
    %c0_4 = arith.constant 0 : index
    %19 = vector.load %arg2[%c0_3, %c0_4] : memref<8x128xf32, #tpu.memory_space<vmem>>, vector<8x128xf32>
    tpu.vector_store %arg2[%c0_3, %c0_4], %18 {strides = array<i32>} : memref<8x128xf32, #tpu.memory_space<vmem>>, vector<8x128xf32>,
    return
  }
}

</mosaic_0001>

<bundles_post_ra>
// kernel: quantum_shadow_noise_forward.1
= control target key start
LH: loop header
LB: loop body
LE: loop exit
PB: predicated region body
PF: predicated region fallthrough
CT: control target
= control target key end

     0   :  { %v89_v1 = vmov 0   ;;  %v90_v2 = vmov 2   ;;  %s117_s0 = inlined_call_operand.vmem [shape: f32[8,3], index: 0, kind: input, shape index: {}]   ;;  %s118_s1 = inlined_call_operand.vmem [shape: f32[3,128], index: 1, kind: input, shape index: {}]   ;;  %s119_s2 = inlined_call_operand.hbm [shape: f32[8,128], index: 2, kind: output, shape index: {}]  }
   0x1   :  { %v12_v0 = vld [vmem:[%s117_s0] sm:$0xff]  ;;  %63 = vset.pattern.permute.xlu0 %v89_v1  ;;  %65 = vset.pattern.permute.xlu1 %v90_v2 }
   0x2   :  { %7 = vsyncpa [#allocation3], 0  ;;  %16 = vperm.xlu0 %63, %v12_v0   ;;  %35 = vperm.xlu1 %65, %v12_v0   ;;  %v91_v3 = vmov 1   ;;  %v19_v4 = vlaneseq  ;;  %v13_v9 = vld [vmem:[%s118_s1] sm:$0x7]  ;;  %s92_s0 = smov [#allocation2]  }
   0x3   :  { %s51_s13 = sshll.u32 %s92_s0, 4  ;;  %s52_s13 = int_to_ptr.vmem [resolvable:$true] %s51_s13 }
   0x4   :  { %v20_v5 = vshrl.u32 %v19_v4, 7  ;;  %s67_s14 = scalar_lea.vmem %s52_s13, 128  ;;  %p72_p1 = scmp.lt.s32.totalorder %s52_s13, %s52_s13 }
   0x5   :  { %p68_p0 = scmp.ne.s32.totalorder %s52_s13, %s67_s14  ;;  %p73_p2 = scmp.lt.s32.totalorder %s67_s14, %s67_s14 }
   0x6   :  { %64 = vset.pattern.permute.xlu0 %v91_v3  ;;  %v21_v6 = vsub.s32 0, %v20_v5  ;;  %v30_v7 = vsub.s32 1, %v20_v5  ;;  %v40_v8 = vsub.s32 2, %v20_v5 }
   0x7   :  { %25 = vperm.xlu0 %64, %v12_v0   ;;  %p74_p3 = por %p73_p2, %p72_p1 }
   0x8   :  { %v22_v11 = vrot.slane %v13_v9, %v21_v6  ;;  %v31_v12 = vrot.slane %v13_v9, %v30_v7  ;;  %v41_v13 = vrot.slane %v13_v9, %v40_v8 }
   0x9   :  { %p75_p4 = pnand %p74_p3, %p68_p0 }
   0xb   :  { %66 = vset.pattern.permute.xlu0 %v90_v2 }
  0x7d   :  { %v17_v10 = vpop.permute.xlu0 %16  ;;  %v36_v14 = vpop.permute.xlu1 %35 }
  0x7e   :  { %v23_v16 = vmul.f32 %v22_v11, %v17_v10  ;;  %v42_v18 = vmul.f32 %v41_v13, %v36_v14 }
  0x82   :  { %v26_v15 = vpop.permute.xlu0 %25 }
  0x83   :  { %v32_v17 = vmul.f32 %v31_v12, %v26_v15 }
  0x85   :  { %v33_v19 = vadd.f32 %v32_v17, %v23_v16 }
  0x87   :  { %v43_v20 = vadd.f32 %v42_v18, %v33_v19 }
  0x89   :  { %44 = vst [vmem:[#allocation2] sm:$0xff] %v43_v20 }
  0x8a   :  { %78 = shalt.err (!%p75_p4)
}
  0x8b   :  { %54 = dma.vmem_to_hbm [thread:$0]  %s52_s13, 128, %s119_s2, [#allocation3]  }
  0x8c   :  { %87 = dma.done.wait [#allocation3], 128  }
  0x8d   :  { %88 = vsyncadd [#allocation3], 4294967168 }
  0x8e   :  { %58 = vsyncpa [#allocation3], 1 }

</bundles_post_ra>
